<compile_context>
chip_gen: v7x
topology: tpu7x:2x2x1
jax: 0.10.0
libtpu: 0.0.40
codegen_flags: <defaults>
</compile_context>

<pallas_src>
import functools

import jax
import jax.numpy as jnp
import numpy as np
from jax.experimental import pallas as pl
from jax.experimental.pallas import tpu as pltpu

# ---------------- small, module-consistent sizes ----------------
B = 2            # batch
EMBED = 32       # embedding dim
NUM_ENT = 16     # number of entities
GAMMA = 40.0     # args.get('gamma', 40)

BATCH_TILE = 8   # sublane-aligned batch tile
ENT_TILE = 128   # lane-dense entity tile (multiple of 128)


# ---------------- Pallas kernel ----------------
def transe_kernel(sub_ref,   # VMEM [TB, E]    : subject embeddings (padded batch tile)
                  rel_ref,   # VMEM [TB, E]    : relation embeddings
                  aet_ref,   # VMEM [E, TN]    : all_ent transposed (entity tile, lane-dense)
                  out_ref,   # VMEM [TB, TN]   : sigmoid scores
                  *, gamma):
    obj = sub_ref[...] + rel_ref[...]                       # [TB, E]
    # L1 distance to every entity in this tile:
    #   dist[b, n] = sum_e |obj[b, e] - aet[e, n]|
    diff = obj[:, :, None] - aet_ref[...][None, :, :]       # [TB, E, TN]
    dist = jnp.sum(jnp.abs(diff), axis=1)                   # [TB, TN] (sublane reduce)
    out_ref[...] = jax.nn.sigmoid(gamma - dist)             # lane-dense store


# ---------------- wrapper (padding / tiling glue) ----------------
def transe_forward(all_ent, sub_emb, rel_emb, gamma=GAMMA):
    n_ent, e = all_ent.shape
    b = sub_emb.shape[0]

    b_pad = pl.cdiv(b, BATCH_TILE) * BATCH_TILE
    n_pad = pl.cdiv(n_ent, ENT_TILE) * ENT_TILE

    sub_p = jnp.zeros((b_pad, e), jnp.float32).at[:b].set(sub_emb)
    rel_p = jnp.zeros((b_pad, e), jnp.float32).at[:b].set(rel_emb)
    # entities on the lane axis; zero-pad extra entity columns (sliced off below)
    aet = jnp.zeros((e, n_pad), jnp.float32).at[:, :n_ent].set(all_ent.T)

    grid = (b_pad // BATCH_TILE, n_pad // ENT_TILE)

    out = pl.pallas_call(
        functools.partial(transe_kernel, gamma=float(gamma)),
        out_shape=jax.ShapeDtypeStruct((b_pad, n_pad), jnp.float32),
        grid_spec=pltpu.PrefetchScalarGridSpec(
            num_scalar_prefetch=0,
            grid=grid,
            in_specs=[
                pl.BlockSpec((BATCH_TILE, e), lambda i, j: (i, 0)),
                pl.BlockSpec((BATCH_TILE, e), lambda i, j: (i, 0)),
                pl.BlockSpec((e, ENT_TILE), lambda i, j: (0, j)),
            ],
            out_specs=pl.BlockSpec((BATCH_TILE, ENT_TILE), lambda i, j: (i, j)),
        ),
        compiler_params=pltpu.CompilerParams(
            dimension_semantics=("parallel", "parallel")),
    )(sub_p, rel_p, aet)

    return out[:b, :n_ent]


# ---------------- pure-JAX reference (for correctness check) ----------------
def transe_reference(all_ent, sub_emb, rel_emb, gamma=GAMMA):
    obj = sub_emb + rel_emb
    dist = jnp.sum(jnp.abs(obj[:, None, :] - all_ent[None, :, :]), axis=2)
    return jax.nn.sigmoid(gamma - dist)


if __name__ == "__main__":
    keys = jax.random.split(jax.random.PRNGKey(0), 3)

    sub_emb = jax.random.normal(keys[0], (B, EMBED), jnp.float32)
    rel_emb = jax.random.normal(keys[1], (B, EMBED), jnp.float32)
    all_ent = jax.random.normal(keys[2], (NUM_ENT, EMBED), jnp.float32)

    out = jax.jit(transe_forward)(all_ent, sub_emb, rel_emb)
    out = jax.block_until_ready(out)

    ref = transe_reference(all_ent, sub_emb, rel_emb)
    np.testing.assert_allclose(np.asarray(out), np.asarray(ref),
                               rtol=1e-4, atol=1e-4)
    print("KERNEL_OK")
</pallas_src>

<mosaic_0001>
module attributes {stable_mosaic.version = 11 : i64} {
  func.func @transe_kernel(%arg0: i32, %arg1: i32, %arg2: memref<8x32xf32, #tpu.memory_space<vmem>>, %arg3: memref<8x32xf32, #tpu.memory_space<vmem>>, %arg4: memref<32x128xf32, #tpu.memory_space<vmem>>, %arg5: memref<8x128xf32, #tpu.memory_space<vmem>>) attributes {dimension_semantics = [#tpu.dimension_semantics<parallel>, #tpu.dimension_semantics<parallel>], iteration_bounds = array<i64: 1, 1>, scalar_prefetch = 0 : i64, scratch_operands = 0 : i64, tpu.core_type = #tpu.core_type<tc>, window_params = [{transform_indices = @transform_0, window_bounds = array<i64: 8, 32>}, {transform_indices = @transform_1, window_bounds = array<i64: 8, 32>}, {transform_indices = @transform_2, window_bounds = array<i64: 32, 128>}, {transform_indices = @transform_3, window_bounds = array<i64: 8, 128>}]} {
    %c0 = arith.constant 0 : index
    %c0_0 = arith.constant 0 : index
    %0 = vector.load %arg2[%c0, %c0_0] : memref<8x32xf32, #tpu.memory_space<vmem>>, vector<8x32xf32>
    %c0_1 = arith.constant 0 : index
    %c0_2 = arith.constant 0 : index
    %1 = vector.load %arg3[%c0_1, %c0_2] : memref<8x32xf32, #tpu.memory_space<vmem>>, vector<8x32xf32>
    %2 = arith.addf %0, %1 : vector<8x32xf32>
    %3 = vector.shape_cast %2 : vector<8x32xf32> to vector<8x32x1xf32>
    %c0_3 = arith.constant 0 : index
    %c0_4 = arith.constant 0 : index
    %4 = vector.load %arg4[%c0_3, %c0_4] : memref<32x128xf32, #tpu.memory_space<vmem>>, vector<32x128xf32>
    %5 = vector.shape_cast %4 : vector<32x128xf32> to vector<1x32x128xf32>
    %6 = vector.broadcast %3 : vector<8x32x1xf32> to vector<8x32x128xf32>
    %7 = vector.broadcast %5 : vector<1x32x128xf32> to vector<8x32x128xf32>
    %8 = arith.subf %6, %7 : vector<8x32x128xf32>
    %9 = math.absf %8 : vector<8x32x128xf32>
    %cst = arith.constant dense<0.000000e+00> : vector<8x128xf32>
    %10 = vector.multi_reduction <add>, %9, %cst [1] : vector<8x32x128xf32> to vector<8x128xf32>
    %cst_5 = arith.constant 4.000000e+01 : f32
    %11 = vector.broadcast %cst_5 : f32 to vector<8x128xf32>
    %12 = arith.subf %11, %10 : vector<8x128xf32>
    %13 = arith.negf %12 : vector<8x128xf32>
    %14 = math.exp %13 : vector<8x128xf32>
    %cst_6 = arith.constant 1.000000e+00 : f32
    %15 = vector.broadcast %cst_6 : f32 to vector<8x128xf32>
    %16 = arith.addf %15, %14 : vector<8x128xf32>
    %17 = arith.divf %15, %16 : vector<8x128xf32>
    %c0_7 = arith.constant 0 : index
    %c0_8 = arith.constant 0 : index
    %18 = vector.load %arg5[%c0_7, %c0_8] : memref<8x128xf32, #tpu.memory_space<vmem>>, vector<8x128xf32>
    tpu.vector_store %arg5[%c0_7, %c0_8], %17 {strides = array<i32>} : memref<8x128xf32, #tpu.memory_space<vmem>>, vector<8x128xf32>,
    return
  }
  func.func @transform_0(%arg0: i32, %arg1: i32) -> (i32, i32) {
    %c0_i32 = arith.constant 0 : i32
    %c0_i32_0 = arith.constant 0 : i32
    return %arg0, %c0_i32 : i32, i32
  }
  func.func @transform_1(%arg0: i32, %arg1: i32) -> (i32, i32) {
    %c0_i32 = arith.constant 0 : i32
    %c0_i32_0 = arith.constant 0 : i32
    return %arg0, %c0_i32 : i32, i32
  }
  func.func @transform_2(%arg0: i32, %arg1: i32) -> (i32, i32) {
    %c0_i32 = arith.constant 0 : i32
    %c0_i32_0 = arith.constant 0 : i32
    return %c0_i32, %arg1 : i32, i32
  }
  func.func @transform_3(%arg0: i32, %arg1: i32) -> (i32, i32) {
    %c0_i32 = arith.constant 0 : i32
    return %arg0, %arg1 : i32, i32
  }
}

</mosaic_0001>

<bundles_post_ra>
// kernel: transe_forward.1
= control target key start
LH: loop header
LB: loop body
LE: loop exit
PB: predicated region body
PF: predicated region fallthrough
CT: control target
= control target key end

     0   :  { %v17_v0 = vlaneseq  ;;  %vm373_vm0 = vcmask 1041409   ;;  %vm375_vm1 = vcmask 1042434   ;;  %vm377_vm2 = vcmask 1043459   ;;  %s517_s0 = inlined_call_operand.vmem [shape: f32[8,32], index: 0, kind: input, shape index: {}]   ;;  %s518_s1 = inlined_call_operand.vmem [shape: f32[8,32], index: 1, kind: input, shape index: {}]   ;;  %s519_s2 = inlined_call_operand.vmem [shape: f32[32,128], index: 2, kind: input, shape index: {}]   ;;  %s520_s3 = inlined_call_operand.vmem [shape: f32[8,128], index: 3, kind: output, shape index: {}]  }
   0x1   :  { %v14_v1 = vld [vmem:[%s517_s0] sm:$0xff]  ;;  %v462_v31 = vld [vmem:[%s519_s2 + $0x8] sm:$0xff]  ;;  %v473_v34 = vld [vmem:[%s519_s2 + $0x10] sm:$0xff]  ;;  %vm379_vm3 = vcmask 1044484   ;;  %vm381_vm4 = vcmask 1045509   ;;  %vm383_vm5 = vcmask 1046534  }
   0x2   :  { %v15_v2 = vld [vmem:[%s518_s1] sm:$0xff]  ;;  %v18_v4 = vshrl.u32 %v17_v0, 7  ;;  %v481_v38 = vld [vmem:[%s519_s2 + $0x18] sm:$0xff]  ;;  %vm385_vm6 = vcmask 1047559  }
   0x3   :  { %v16_v3 = vadd.f32 %v15_v2, %v14_v1  ;;  %v467_v32 = vld [vmem:[%s519_s2] sm:$0xff] }
   0x4   :  { %v38_v5 = vsub.s32 1, %v18_v4  ;;  %v19_v6 = vsub.s32 0, %v18_v4  ;;  %v57_v9 = vsub.s32 2, %v18_v4  ;;  %v76_v11 = vsub.s32 3, %v18_v4 }
   0x5   :  { %v95_v13 = vsub.s32 4, %v18_v4  ;;  %v114_v15 = vsub.s32 5, %v18_v4  ;;  %v133_v17 = vsub.s32 6, %v18_v4  ;;  %v152_v19 = vsub.s32 7, %v18_v4 }
   0x6   :  { %v39_v7 = vrot.slane %v16_v3, %v38_v5  ;;  %v20_v8 = vrot.slane %v16_v3, %v19_v6  ;;  %v58_v10 = vrot.slane %v16_v3, %v57_v9  ;;  %v77_v12 = vrot.slane %v16_v3, %v76_v11 }
   0x7   :  { %v96_v14 = vrot.slane %v16_v3, %v95_v13  ;;  %v115_v16 = vrot.slane %v16_v3, %v114_v15  ;;  %v134_v18 = vrot.slane %v16_v3, %v133_v17  ;;  %v153_v20 = vrot.slane %v16_v3, %v152_v19 }
   0x8   :  { %41 = vbcast.lane.b32.xlu1 %v39_v7, 256  ;;  %22 = vbcast.lane.b32.xlu0 %v20_v8, 256 }
   0xc   :  { %45 = vbcast.lane.b32.xlu1 %v39_v7, 264  ;;  %26 = vbcast.lane.b32.xlu0 %v20_v8, 264 }
  0x10   :  { %64 = vbcast.lane.b32.xlu1 %v58_v10, 264  ;;  %60 = vbcast.lane.b32.xlu0 %v58_v10, 256 }
  0x14   :  { %49 = vbcast.lane.b32.xlu1 %v39_v7, 272  ;;  %30 = vbcast.lane.b32.xlu0 %v20_v8, 272 }
  0x18   :  { %83 = vbcast.lane.b32.xlu1 %v77_v12, 264  ;;  %79 = vbcast.lane.b32.xlu0 %v77_v12, 256 }
  0x1c   :  { %98 = vbcast.lane.b32.xlu1 %v96_v14, 256  ;;  %68 = vbcast.lane.b32.xlu0 %v58_v10, 272 }
  0x20   :  { %34 = vbcast.lane.b32.xlu1 %v20_v8, 280  ;;  %102 = vbcast.lane.b32.xlu0 %v96_v14, 264 }
  0x24   :  { %87 = vbcast.lane.b32.xlu1 %v77_v12, 272  ;;  %53 = vbcast.lane.b32.xlu0 %v39_v7, 280 }
  0x28   :  { %121 = vbcast.lane.b32.xlu1 %v115_v16, 264  ;;  %117 = vbcast.lane.b32.xlu0 %v115_v16, 256 }
  0x2c   :  { %106 = vbcast.lane.b32.xlu1 %v96_v14, 272  ;;  %72 = vbcast.lane.b32.xlu0 %v58_v10, 280 }
  0x30   :  { %140 = vbcast.lane.b32.xlu1 %v134_v18, 264  ;;  %136 = vbcast.lane.b32.xlu0 %v134_v18, 256 }
  0x34   :  { %125 = vbcast.lane.b32.xlu1 %v115_v16, 272  ;;  %91 = vbcast.lane.b32.xlu0 %v77_v12, 280 }
  0x38   :  { %159 = vbcast.lane.b32.xlu1 %v153_v20, 264  ;;  %155 = vbcast.lane.b32.xlu0 %v153_v20, 256 }
  0x3c   :  { %144 = vbcast.lane.b32.xlu1 %v134_v18, 272  ;;  %110 = vbcast.lane.b32.xlu0 %v96_v14, 280 }
  0x40   :  { %163 = vbcast.lane.b32.xlu1 %v153_v20, 272  ;;  %129 = vbcast.lane.b32.xlu0 %v115_v16, 280 }
  0x44   :  { %167 = vbcast.lane.b32.xlu1 %v153_v20, 280  ;;  %148 = vbcast.lane.b32.xlu0 %v134_v18, 280 }
  0x7a   :  { %v42_v21 = vpop.permute.xlu1 %41  ;;  %v23_v22 = vpop.permute.xlu0 %22 }
  0x7b   :  { %v173_v37 = vsub.f32 %v23_v22, %v467_v32  ;;  %v177_v45 = vsub.f32 %v42_v21, %v467_v32 }
  0x7d   :  { %v205_v46 = vand.u32 2147483647, %v173_v37  ;;  %v209_v57 = vand.u32 2147483647, %v177_v45 }
  0x7e   :  { %v46_v23 = vpop.permute.xlu1 %45  ;;  %v27_v24 = vpop.permute.xlu0 %26 }
  0x7f   :  { %v174_v33 = vsub.f32 %v27_v24, %v462_v31  ;;  %v178_v40 = vsub.f32 %v46_v23, %v462_v31 }
  0x81   :  { %v206_v41 = vand.u32 2147483647, %v174_v33  ;;  %v210_v49 = vand.u32 2147483647, %v178_v40 }
  0x82   :  { %v65_v25 = vpop.permute.xlu1 %64  ;;  %v61_v26 = vpop.permute.xlu0 %60 }
  0x83   :  { %v237_v50 = vadd.f32 %v206_v41, %v205_v46  ;;  %v182_v53 = vsub.f32 %v65_v25, %v462_v31  ;;  %v181_v54 = vsub.f32 %v61_v26, %v467_v32  ;;  %v246_v61 = vadd.f32 %v210_v49, %v209_v57 }
  0x85   :  { %v214_v0 = vand.u32 2147483647, %v182_v53  ;;  %v213_v1 = vand.u32 2147483647, %v181_v54 }
  0x86   :  { %v50_v27 = vpop.permute.xlu1 %49  ;;  %v31_v28 = vpop.permute.xlu0 %30 }
  0x87   :  { %v175_v39 = vsub.f32 %v31_v28, %v473_v34  ;;  %v179_v47 = vsub.f32 %v50_v27, %v473_v34  ;;  %v255_v8 = vadd.f32 %v214_v0, %v213_v1 }
  0x89   :  { %v207_v48 = vand.u32 2147483647, %v175_v39  ;;  %v211_v58 = vand.u32 2147483647, %v179_v47 }
  0x8a   :  { %v84_v29 = vpop.permute.xlu1 %83  ;;  %v80_v30 = vpop.permute.xlu0 %79 }
  0x8b   :  { %v238_v59 = vadd.f32 %v237_v50, %v207_v48  ;;  %v247_v4 = vadd.f32 %v246_v61, %v211_v58  ;;  %v186_v12 = vsub.f32 %v84_v29, %v462_v31  ;;  %v185_v13 = vsub.f32 %v80_v30, %v467_v32 }
  0x8d   :  { %v218_v22 = vand.u32 2147483647, %v186_v12  ;;  %v217_v23 = vand.u32 2147483647, %v185_v13 }
  0x8e   :  { %v475_v35 = vpop.permute.xlu1 %98  ;;  %v69_v36 = vpop.permute.xlu0 %68 }
  0x8f   :  { %v183_v60 = vsub.f32 %v69_v36, %v473_v34  ;;  %v189_v29 = vsub.f32 %v475_v35, %v467_v32  ;;  %v264_v36 = vadd.f32 %v218_v22, %v217_v23 }
  0x91   :  { %v215_v5 = vand.u32 2147483647, %v183_v60  ;;  %v221_v47 = vand.u32 2147483647, %v189_v29 }
  0x92   :  { %v35_v42 = vpop.permute.xlu1 %34  ;;  %v103_v43 = vpop.permute.xlu0 %102 }
  0x93   :  { %v176_v44 = vsub.f32 %v35_v42, %v481_v38  ;;  %v256_v14 = vadd.f32 %v255_v8, %v215_v5  ;;  %v190_v24 = vsub.f32 %v103_v43, %v462_v31 }
  0x95   :  { %v208_v55 = vand.u32 2147483647, %v176_v44  ;;  %v222_v40 = vand.u32 2147483647, %v190_v24 }
  0x96   :  { %v88_v51 = vpop.permute.xlu1 %87  ;;  %v54_v52 = vpop.permute.xlu0 %53 }
  0x97   :  { %v180_v56 = vsub.f32 %v54_v52, %v481_v38  ;;  %v239_v2 = vadd.f32 %v238_v59, %v208_v55  ;;  %v187_v16 = vsub.f32 %v88_v51, %v473_v34  ;;  %v273_v53 = vadd.f32 %v222_v40, %v221_v47 }
  0x99   :  { %v212_v3 = vand.u32 2147483647, %v180_v56  ;;  %v240_v9 = vrot.slane %v239_v2, 4  ;;  %v219_v26 = vand.u32 2147483647, %v187_v16 }
  0x9a   :  { %v122_v62 = vpop.permute.xlu1 %121  ;;  %v118_v63 = vpop.permute.xlu0 %117 }
  0x9b   :  { %v248_v10 = vadd.f32 %v247_v4, %v212_v3  ;;  %v241_v19 = vadd.f32 %v240_v9, %v239_v2  ;;  %v265_v42 = vadd.f32 %v264_v36, %v219_v26  ;;  %v194_v44 = vsub.f32 %v122_v62, %v462_v31 }
  0x9c   :  { %v193_v35 = vsub.f32 %v118_v63, %v467_v32 }
  0x9d   :  { %v249_v20 = vrot.slane %v248_v10, 4  ;;  %v242_v30 = vrot.slane %v241_v19, 2  ;;  %v226_v57 = vand.u32 2147483647, %v194_v44 }
  0x9e   :  { %v107_v6 = vpop.permute.xlu1 %106  ;;  %v73_v7 = vpop.permute.xlu0 %72  ;;  %v225_v1 = vand.u32 2147483647, %v193_v35 }
  0x9f   :  { %v184_v11 = vsub.f32 %v73_v7, %v481_v38  ;;  %v250_v33 = vadd.f32 %v249_v20, %v248_v10  ;;  %v191_v41 = vsub.f32 %v107_v6, %v473_v34  ;;  %v243_v48 = vadd.f32 %v242_v30, %v241_v19 }
  0xa1   :  { %v216_v15 = vand.u32 2147483647, %v184_v11  ;;  %v251_v49 = vrot.slane %v250_v33, 2  ;;  %v223_v54 = vand.u32 2147483647, %v191_v41  ;;  %v244_v0 = vrot.slane %v243_v48, 1 }
  0xa2   :  { %v141_v17 = vpop.permute.xlu1 %140  ;;  %v137_v18 = vpop.permute.xlu0 %136 }
  0xa3   :  { %v257_v21 = vadd.f32 %v256_v14, %v216_v15  ;;  %v198_v51 = vsub.f32 %v141_v17, %v462_v31  ;;  %v197_v55 = vsub.f32 %v137_v18, %v467_v32  ;;  %v252_v63 = vadd.f32 %v251_v49, %v250_v33 }
  0xa4   :  { %v274_v7 = vadd.f32 %v273_v53, %v223_v54  ;;  %v282_v15 = vadd.f32 %v226_v57, %v225_v1  ;;  %v245_v22 = vadd.f32 %v244_v0, %v243_v48 }
  0xa5   :  { %v258_v25 = vrot.slane %v257_v21, 4  ;;  %v230_v4 = vand.u32 2147483647, %v198_v51  ;;  %v229_v8 = vand.u32 2147483647, %v197_v55  ;;  %v253_v14 = vrot.slane %v252_v63, 1 }
  0xa6   :  { %v126_v27 = vpop.permute.xlu1 %125  ;;  %v92_v28 = vpop.permute.xlu0 %91  ;;  %v309_v48 = vsub.f32 40.0, %v245_v22 }
  0xa7   :  { %v259_v37 = vadd.f32 %v258_v25, %v257_v21  ;;  %v188_v39 = vsub.f32 %v92_v28, %v481_v38  ;;  %v195_v56 = vsub.f32 %v126_v27, %v473_v34  ;;  %v291_v23 = vadd.f32 %v230_v4, %v229_v8 }
  0xa8   :  { %v254_v36 = vadd.f32 %v253_v14, %v252_v63 }
  0xa9   :  { %v220_v43 = vand.u32 2147483647, %v188_v39  ;;  %v260_v50 = vrot.slane %v259_v37, 2  ;;  %v227_v9 = vand.u32 2147483647, %v195_v56 }
  0xaa   :  { %v160_v45 = vpop.permute.xlu1 %159  ;;  %v156_v46 = vpop.permute.xlu0 %155  ;;  %v310_v35 = vsub.f32 40.0, %v254_v36 }
  0xab   :  { %v266_v52 = vadd.f32 %v265_v42, %v220_v43  ;;  %v202_v59 = vsub.f32 %v160_v45, %v462_v31  ;;  %v201_v60 = vsub.f32 %v156_v46, %v467_v32  ;;  %v261_v3 = vadd.f32 %v260_v50, %v259_v37 }
  0xac   :  { %v283_v26 = vadd.f32 %v282_v15, %v227_v9 }
  0xad   :  { %v267_v58 = vrot.slane %v266_v52, 4  ;;  %v234_v31 = vand.u32 2147483647, %v202_v59  ;;  %v233_v12 = vand.u32 2147483647, %v201_v60  ;;  %v262_v18 = vrot.slane %v261_v3, 1 }
  0xae   :  { %v145_v61 = vpop.permute.xlu1 %144  ;;  %v111_v62 = vpop.permute.xlu0 %110  ;;  %v394_v60 = vmul.f32 -1.442695, %v310_v35 }
  0xaf   :  { %v192_v2 = vsub.f32 %v111_v62, %v481_v38  ;;  %v268_v5 = vadd.f32 %v267_v58, %v266_v52  ;;  %v199_v6 = vsub.f32 %v145_v61, %v473_v34  ;;  %v300_v28 = vadd.f32 %v234_v31, %v233_v12 }
  0xb0   :  { %v263_v40 = vadd.f32 %v262_v18, %v261_v3  ;;  %v393_v58 = vmul.f32 -1.442695, %v309_v48 }
  0xb1   :  { %v224_v10 = vand.u32 2147483647, %v192_v2  ;;  %v269_v11 = vrot.slane %v268_v5, 2  ;;  %v231_v20 = vand.u32 2147483647, %v199_v6 }
  0xb2   :  { %v164_v32 = vpop.permute.xlu1 %163  ;;  %v130_v13 = vpop.permute.xlu0 %129  ;;  %v311_v53 = vsub.f32 40.0, %v263_v40  ;;  %401 = vpow2.f32 %v393_v58 }
  0xb3   :  { %v275_v16 = vadd.f32 %v274_v7, %v224_v10  ;;  %v203_v17 = vsub.f32 %v164_v32, %v473_v34  ;;  %v270_v19 = vadd.f32 %v269_v11, %v268_v5  ;;  %v196_v21 = vsub.f32 %v130_v13, %v481_v38 }
  0xb4   :  { %v292_v41 = vadd.f32 %v291_v23, %v231_v20  ;;  %v395_v63 = vmul.f32 -1.442695, %v311_v53  ;;  %403 = vpow2.f32 %v394_v60 }
  0xb5   :  { %v276_v24 = vrot.slane %v275_v16, 4  ;;  %v235_v25 = vand.u32 2147483647, %v203_v17  ;;  %v271_v27 = vrot.slane %v270_v19, 1  ;;  %v228_v29 = vand.u32 2147483647, %v196_v21 }
  0xb6   :  { %v168_v30 = vpop.permute.xlu1 %167  ;;  %v149_v33 = vpop.permute.xlu0 %148  ;;  %405 = vpow2.f32 %v395_v63 }
  0xb7   :  { %v277_v37 = vadd.f32 %v276_v24, %v275_v16  ;;  %v204_v39 = vsub.f32 %v168_v30, %v481_v38  ;;  %v200_v34 = vsub.f32 %v149_v33, %v481_v38  ;;  %v301_v42 = vadd.f32 %v300_v28, %v235_v25 }
  0xb8   :  { %v284_v44 = vadd.f32 %v283_v26, %v228_v29  ;;  %v272_v43 = vadd.f32 %v271_v27, %v270_v19 }
  0xb9   :  { %v278_v45 = vrot.slane %v277_v37, 2  ;;  %v236_v46 = vand.u32 2147483647, %v204_v39  ;;  %v232_v47 = vand.u32 2147483647, %v200_v34 }
  0xba   :  { %v285_v49 = vrot.slane %v284_v44, 4  ;;  %v312_v55 = vsub.f32 40.0, %v272_v43 }
  0xbb   :  { %v279_v50 = vadd.f32 %v278_v45, %v277_v37  ;;  %v302_v51 = vadd.f32 %v301_v42, %v236_v46  ;;  %v293_v52 = vadd.f32 %v292_v41, %v232_v47 }
  0xbc   :  { %v286_v54 = vadd.f32 %v285_v49, %v284_v44  ;;  %v396_v2 = vmul.f32 -1.442695, %v312_v55  ;;  %v402_v19 = vpop.eup %401 }
  0xbd   :  { %v280_v56 = vrot.slane %v279_v50, 1  ;;  %v303_v57 = vrot.slane %v302_v51, 4  ;;  %v294_v38 = vrot.slane %v293_v52, 4  ;;  %v341_v23 = vadd.f32 1.0, %v402_v19 }
  0xbe   :  { %v287_v59 = vrot.slane %v286_v54, 2  ;;  %407 = vpow2.f32 %v396_v2  ;;  %v404_v20 = vpop.eup %403 }
  0xbf   :  { %v281_v61 = vadd.f32 %v280_v56, %v279_v50  ;;  %v304_v62 = vadd.f32 %v303_v57, %v302_v51  ;;  %v295_v0 = vadd.f32 %v294_v38, %v293_v52  ;;  %v342_v25 = vadd.f32 1.0, %v404_v20 }
  0xc0   :  { %v288_v1 = vadd.f32 %v287_v59, %v286_v54  ;;  %v406_v21 = vpop.eup %405 }
  0xc1   :  { %v313_v3 = vsub.f32 40.0, %v281_v61  ;;  %v305_v4 = vrot.slane %v304_v62, 2  ;;  %v296_v5 = vrot.slane %v295_v0, 2  ;;  %v343_v26 = vadd.f32 1.0, %v406_v21 }
  0xc2   :  { %v289_v6 = vrot.slane %v288_v1, 1 }
  0xc3   :  { %v397_v7 = vmul.f32 -1.442695, %v313_v3  ;;  %v306_v8 = vadd.f32 %v305_v4, %v304_v62  ;;  %v297_v9 = vadd.f32 %v296_v5, %v295_v0 }
  0xc4   :  { %v290_v10 = vadd.f32 %v289_v6, %v288_v1 }
  0xc5   :  { %v307_v11 = vrot.slane %v306_v8, 1  ;;  %v298_v31 = vrot.slane %v297_v9, 1  ;;  %409 = vpow2.f32 %v397_v7 }
  0xc6   :  { %v314_v12 = vsub.f32 40.0, %v290_v10 }
  0xc7   :  { %v308_v32 = vadd.f32 %v307_v11, %v306_v8  ;;  %v299_v13 = vadd.f32 %v298_v31, %v297_v9 }
  0xc8   :  { %v398_v14 = vmul.f32 -1.442695, %v314_v12  ;;  %v408_v22 = vpop.eup %407 }
  0xc9   :  { %v316_v15 = vsub.f32 40.0, %v308_v32  ;;  %v315_v16 = vsub.f32 40.0, %v299_v13  ;;  %v344_v27 = vadd.f32 1.0, %v408_v22 }
  0xca   :  { %411 = vpow2.f32 %v398_v14 }
  0xcb   :  { %v400_v17 = vmul.f32 -1.442695, %v316_v15  ;;  %v399_v18 = vmul.f32 -1.442695, %v315_v16 }
  0xcd   :  { %413 = vpow2.f32 %v400_v17 }
  0xce   :  { %415 = vpow2.f32 %v399_v18 }
  0xcf   :  { %v410_v24 = vpop.eup %409  ;;  %417 = vrcp.f32 %v341_v23 }
  0xd0   :  { %v345_v28 = vadd.f32 1.0, %v410_v24  ;;  %419 = vrcp.f32 %v342_v25 }
  0xd1   :  { %421 = vrcp.f32 %v343_v26 }
  0xd2   :  { %423 = vrcp.f32 %v344_v27 }
  0xd3   :  { %425 = vrcp.f32 %v345_v28 }
  0xd4   :  { %v412_v29 = vpop.eup %411 }
  0xd5   :  { %v346_v30 = vadd.f32 1.0, %v412_v29 }
  0xd7   :  { %v414_v33 = vpop.eup %413  ;;  %427 = vrcp.f32 %v346_v30 }
  0xd8   :  { %v416_v36 = vpop.eup %415  ;;  %v348_v37 = vadd.f32 1.0, %v414_v33 }
  0xd9   :  { %v347_v39 = vadd.f32 1.0, %v416_v36  ;;  %v418_v34 = vpop.eup %417 }
  0xda   :  { %429 = vrcp.f32 %v348_v37  ;;  %v420_v40 = vpop.eup %419 }
  0xdb   :  { %431 = vrcp.f32 %v347_v39  ;;  %v422_v41 = vpop.eup %421  ;;  %v374_v43 = vsel %vm373_vm0, %v420_v40, %v418_v34 }
  0xdc   :  { %v424_v42 = vpop.eup %423  ;;  %v376_v46 = vsel %vm375_vm1, %v422_v41, %v374_v43 }
  0xdd   :  { %v426_v44 = vpop.eup %425  ;;  %v378_v47 = vsel %vm377_vm2, %v424_v42, %v376_v46 }
  0xde   :  { %v380_v49 = vsel %vm379_vm3, %v426_v44, %v378_v47 }
  0xe1   :  { %v428_v45 = vpop.eup %427 }
  0xe2   :  { %v382_v50 = vsel %vm381_vm4, %v428_v45, %v380_v49 }
  0xe4   :  { %v430_v48 = vpop.eup %429 }
  0xe5   :  { %v432_v35 = vpop.eup %431 }
  0xe6   :  { %v384_v51 = vsel %vm383_vm5, %v432_v35, %v382_v50 }
  0xe7   :  { %v386_v52 = vsel %vm385_vm6, %v430_v48, %v384_v51 }
  0xe8   :  { %388 = vst [vmem:[%s520_s3] sm:$0xff] %v386_v52 }

</bundles_post_ra>
